<compile_context>
chip_gen: v5e
topology: v5e:2x2
jax: 0.10.0
libtpu: 0.0.40
codegen_flags: <defaults>
</compile_context>

<pallas_src>
import jax
import jax.numpy as jnp
from jax import lax
from jax.experimental import pallas as pl
from jax.experimental.pallas import tpu as pltpu

KERNEL_SIZE = 5
NUM_BRANCHES = 2
BN_EPS = 1e-5


def _conv1d_out_len(L, pad, dil, k, stride):
    return (L + 2 * pad - dil * (k - 1) - 1) // stride + 1


def _pick_batch_tile(N, s, Mph, Cin, Cout, Lout, budget_bytes):
    """Largest batch tile (divisor of N) whose per-step working set fits the
    VMEM budget.  Non-full tiles must keep the x-block lane width a multiple
    of 128 (Mosaic (8,128) tiling rule).  Single-TC parts (v5e/v6e) want the
    fewest grid steps; the budget caps the tile so v7x's 64 MiB also fits."""
    lane = s * Mph
    cands = [tb for tb in range(1, N + 1)
             if N % tb == 0 and (tb == N or (tb * lane) % 128 == 0)]
    best = min(cands)
    for tb in sorted(cands):
        f_in = tb * lane
        f_out = (tb - 1) * lane + Lout
        step = (2 * Cin * f_in * 2          # double-buffered bf16 input block
                + 2 * Cout * f_out * 4      # double-buffered f32 output block
                + 10 * Cin * f_in * 4)      # rough in-kernel f32 intermediates
        if step <= budget_bytes:
            best = tb
    return best


def _make_block_kernel(*, Cmid, Couth, Mph, Fout, taps0, taps1, sc_off,
                       use_shortcut_conv):
    """Kernel body.  Per grid step the x block is (Cin, F_in) with the lane
    axis flattened as (sample, phase, position): lane = (t*s + q)*Mph + m.
    Every conv tap / shortcut read is then a *static* contiguous lane slice
    (uniform shift q*Mph + m0), and each conv is a single MXU dot."""

    def kernel(*refs):
        x_ref, mask_ref = refs[0], refs[1]
        (a10, b10, w10, b20, w20,
         a11, b11, w11, b21, w21) = refs[2:12]
        if use_shortcut_conv:
            wsc_ref, out_ref, cols_ref = refs[12], refs[13], refs[14]
        else:
            out_ref, cols_ref = refs[12], refs[13]

        xb = x_ref[...]                              # (Cin, F_in) bf16
        x = xb.astype(jnp.float32)                   # BN/ReLU in f32 (VPU)
        mask = mask_ref[...]                         # (1, F_in) f32

        # Shortcut first; each branch is stored as soon as it is ready so at
        # most two (C, Fout) f32 results are live at any time.
        if use_shortcut_conv:
            r = jnp.dot(wsc_ref[...], xb[:, sc_off:sc_off + Fout],
                        preferred_element_type=jnp.float32)   # (Cout, Fout)
        else:
            r = x[:, sc_off:sc_off + Fout]                     # identity

        def branch(a1, b1, w1, b2, w2, taps):
            # BN1 (eval, folded to scale/shift) + ReLU, f32 on the VPU.
            h1 = jnp.maximum(x * a1[...] + b1[...], 0.0)       # (Cin, F_in)
            # 1x1 conv with BN2's scale pre-folded into w1: ONE MXU dot whose
            # free dim is the full batch*phase*length lane axis.
            y = jnp.dot(w1[...], h1.astype(jnp.bfloat16),
                        preferred_element_type=jnp.float32)    # (Cmid, F_in)
            # BN2 shift + ReLU; the mask realizes the k=5 conv's zero padding
            # (Dropout is identity at inference).
            h2 = jnp.maximum(y + b2[...], 0.0) * mask          # (Cmid, F_in)
            # k=5 strided/dilated conv: stack the K static lane-slices along
            # the contraction (sublane) axis, then ONE dot against the packed
            # (Couth, K*Cmid) weight.
            for k, (q, m0) in enumerate(taps):
                off = q * Mph + m0
                cols_ref[k * Cmid:(k + 1) * Cmid, :] = h2[:, off:off + Fout]
            return jnp.dot(w2[...], cols_ref[...].astype(jnp.bfloat16),
                           preferred_element_type=jnp.float32)  # (Couth, Fout)

        y0 = branch(a10, b10, w10, b20, w20, taps0)
        out_ref[0, :Couth, :] = (y0 + r[:Couth, :]).astype(out_ref.dtype)
        y1 = branch(a11, b11, w11, b21, w21, taps1)
        out_ref[0, Couth:, :] = (y1 + r[Couth:, :]).astype(out_ref.dtype)

    return kernel


def _bn_fold(bn):
    """Fold eval-mode BatchNorm into per-channel scale 'a' and shift 'b'."""
    a = bn["gamma"] / jnp.sqrt(bn["var"] + BN_EPS)
    b = bn["beta"] - bn["mean"] * a
    return a.astype(jnp.float32), b.astype(jnp.float32)


def basic_block_forward(x_ncl, params, *, stride, dilation):
    """Pallas implementation.  x_ncl: (N, Cin, L) f32 -> (N, Cout, Lout), NCL."""
    N, Cin, L = x_ncl.shape
    Couth = params["branch0"]["w2"].shape[0]
    Cout = Couth * NUM_BRANCHES
    Cmid = Cin // NUM_BRANCHES
    K = KERNEL_SIZE
    s = stride

    pad0 = (K - 1) // 2
    pad1 = (K - 1) * dilation // 2
    pad_left = max(pad0, pad1)
    Lout = _conv1d_out_len(L, pad0, 1, K, s)
    # Hard guard: both branches must produce the same output length.
    assert Lout == _conv1d_out_len(L, pad1, dilation, K, s)
    use_shortcut_conv = not (Cin == Cout and s == 1)

    # Static polyphase tap table: conv-input index for output l, tap k is
    #   pad_left + l*s + (k*dil - pad)  ==  (m0_k + l)*s + q_k
    def tap_table(dil, pad):
        taps = []
        for k in range(K):
            a = pad_left + k * dil - pad        # >= 0 by construction
            taps.append((a % s, a // s))
        return taps

    taps0 = tap_table(1, pad0)
    taps1 = tap_table(dilation, pad1)
    q_sc, m_sc = pad_left % s, pad_left // s    # shortcut / identity offset

    # Per-phase length: covers the valid data and every tap window.
    need = [m0 + Lout for (_, m0) in taps0 + taps1] + [m_sc + Lout]
    Mph = max([-(-(pad_left + L) // s)] + need)
    Lpad = Mph * s

    # ---- generation-aware tile selection (v5e/v6e 128 MiB vs v7x 64 MiB) ----
    try:
        vmem_cap = int(pltpu.get_tpu_info().vmem_capacity_bytes)
    except Exception:
        vmem_cap = 64 * 1024 * 1024             # conservative (v7x per-core)
    budget = min(vmem_cap // 3, 32 * 1024 * 1024)
    TB = _pick_batch_tile(N, s, Mph, Cin, Cout, Lout, budget)
    G = N // TB
    F_in = TB * s * Mph                         # per-step input lane width
    Fout = (TB - 1) * s * Mph + Lout            # per-step output lane width

    # ---- wrapper-side packing (plain XLA glue; channels stay in sublanes) ----
    xb = x_ncl.astype(jnp.bfloat16)             # halve the dominant HBM read
    xp = jnp.pad(xb, ((0, 0), (0, 0), (pad_left, Lpad - L - pad_left)))
    # x_pack[c, (t*s + q)*Mph + m] = xp[t, c, m*s + q]
    x_pack = (xp.reshape(N, Cin, Mph, s)
                .transpose(1, 0, 3, 2)
                .reshape(Cin, N * s * Mph))

    # Valid-position mask (acts as the k=5 conv's zero padding); one sample's
    # (s, Mph) pattern, flattened and tiled across the TB samples of a step.
    pos = jnp.arange(Mph)[None, :] * s + jnp.arange(s)[:, None]     # (s, Mph)
    valid = ((pos >= pad_left) & (pos < pad_left + L)).astype(jnp.float32)
    mask = jnp.tile(valid.reshape(1, s * Mph), (1, TB))             # (1, F_in)

    def branch_args(bp):
        a1, b1 = _bn_fold(bp["bn1"])                                # (Cin,)
        a2, b2 = _bn_fold(bp["bn2"])                                # (Cmid,)
        # Fold BN2's scale into the 1x1 conv weight (exact row scaling).
        w1 = (a2[:, None] * bp["w1"][:, :, 0]).astype(jnp.bfloat16)  # (Cmid,Cin)
        # Pack k=5 weights to match the tap-stacked operand: row = k*Cmid + c.
        w2p = (jnp.transpose(bp["w2"], (0, 2, 1))
                  .reshape(Couth, K * Cmid).astype(jnp.bfloat16))
        return [a1.reshape(Cin, 1), b1.reshape(Cin, 1), w1,
                b2.reshape(Cmid, 1), w2p]

    operands = [x_pack, mask]
    operands += branch_args(params["branch0"])
    operands += branch_args(params["branch1"])
    if use_shortcut_conv:
        operands.append(params["shortcut_w"][:, :, 0].astype(jnp.bfloat16))

    def const_spec(arr):
        zeros = (0,) * arr.ndim
        return pl.BlockSpec(arr.shape, lambda n, _z=zeros: _z)

    # NOTE: constants could use pipeline_mode=pl.Buffered(1) to avoid double
    # buffering; left at the default since they are tiny at these sizes.
    in_specs = [pl.BlockSpec((Cin, F_in), lambda n: (0, n))]
    in_specs += [const_spec(a) for a in operands[1:]]

    kernel = _make_block_kernel(
        Cmid=Cmid, Couth=Couth, Mph=Mph, Fout=Fout,
        taps0=taps0, taps1=taps1, sc_off=q_sc * Mph + m_sc,
        use_shortcut_conv=use_shortcut_conv)

    out_packed = pl.pallas_call(
        kernel,
        out_shape=jax.ShapeDtypeStruct((G, Cout, Fout), jnp.float32),
        grid=(G,),
        in_specs=in_specs,
        out_specs=pl.BlockSpec((1, Cout, Fout), lambda n: (n, 0, 0)),
        scratch_shapes=[pltpu.VMEM((K * Cmid, Fout), jnp.float32)],
        compiler_params=pltpu.CompilerParams(
            dimension_semantics=("parallel",),
            vmem_limit_bytes=min(vmem_cap // 2, 64 * 1024 * 1024)),
    )(*operands)

    # Unpack the lane-packed output slab back to (N, Cout, Lout).
    tail = TB * s * Mph - Fout
    out = jnp.pad(out_packed, ((0, 0), (0, 0), (0, tail)))
    out = out.reshape(G, Cout, TB, s * Mph).transpose(0, 2, 1, 3)
    return out.reshape(N, Cout, s * Mph)[:, :, :Lout]


# ---------------- pure-JAX reference (PyTorch semantics, eval mode) ----------
def basic_block_ref(x, params, *, stride, dilation):
    def bn(h, p):
        a = p["gamma"] / jnp.sqrt(p["var"] + BN_EPS)
        b = p["beta"] - p["mean"] * a
        return h * a[None, :, None] + b[None, :, None]

    def conv(h, w, s, d, p):
        return lax.conv_general_dilated(
            h, w, window_strides=(s,), padding=[(p, p)], rhs_dilation=(d,),
            dimension_numbers=("NCH", "OIH", "NCH"))

    def branch(h, bp, d, p):
        h = jax.nn.relu(bn(h, bp["bn1"]))
        h = conv(h, bp["w1"], 1, 1, 0)
        h = jax.nn.relu(bn(h, bp["bn2"]))
        # Dropout: identity (eval)
        return conv(h, bp["w2"], stride, d, p)

    pad0 = (KERNEL_SIZE - 1) // 2
    pad1 = (KERNEL_SIZE - 1) * dilation // 2
    x0 = branch(x, params["branch0"], 1, pad0)
    x1 = branch(x, params["branch1"], dilation, pad1)
    out = jnp.concatenate([x0, x1], axis=1)
    if not (x.shape[1] == out.shape[1] and stride == 1):
        r = conv(x, params["shortcut_w"], stride, 1, 0)
    else:
        r = x
    return out + r


# ---------------------------- deterministic setup ----------------------------
def _init_params(key, Cin, Cout):
    Cmid = Cin // NUM_BRANCHES
    Couth = Cout // NUM_BRANCHES
    ks = jax.random.split(key, 12)

    def bn_params(k, C):
        k1, k2, k3, k4 = jax.random.split(k, 4)
        return {"gamma": jax.random.uniform(k1, (C,), minval=0.5, maxval=1.5),
                "beta": jax.random.normal(k2, (C,)) * 0.1,
                "mean": jax.random.normal(k3, (C,)) * 0.1,
                "var": jax.random.uniform(k4, (C,), minval=0.5, maxval=1.5)}

    def branch(kbn1, kw1, kbn2, kw2):
        return {"bn1": bn_params(kbn1, Cin),
                "w1": jax.random.normal(kw1, (Cmid, Cin, 1)) * 0.2,
                "bn2": bn_params(kbn2, Cmid),
                "w2": jax.random.normal(kw2, (Couth, Cmid, KERNEL_SIZE)) * 0.2}

    params = {"branch0": branch(ks[0], ks[1], ks[2], ks[3]),
              "branch1": branch(ks[4], ks[5], ks[6], ks[7]),
              "shortcut_w": jax.random.normal(ks[8], (Cout, Cin, 1)) * 0.2}
    return params


if __name__ == "__main__":
    # Small shapes consistent with the module: x is N x Cin x L.
    N, Cin, L = 2, 8, 16
    Cout, stride, dropout, dilation = 16, 2, 0.1, 2  # dropout unused (eval)

    key = jax.random.PRNGKey(0)
    kx, kp = jax.random.split(key)
    x = jax.random.normal(kx, (N, Cin, L), dtype=jnp.float32)
    params = _init_params(kp, Cin, Cout)

    out = basic_block_forward(x, params, stride=stride, dilation=dilation)
    out = jax.block_until_ready(out)

    ref = basic_block_ref(x, params, stride=stride, dilation=dilation)
    assert out.shape == ref.shape, (out.shape, ref.shape)
    # bf16 input slab + bf16 MXU inputs with f32 accumulation -> compare at a
    # bf16-level tolerance.
    max_err = float(jnp.max(jnp.abs(out - ref)))
    assert max_err < 1e-1, max_err

    print("KERNEL_OK")
</pallas_src>

<mosaic_0001>
module attributes {stable_mosaic.version = 11 : i64} {
  func.func @kernel(%arg0: i32, %arg1: memref<8x48xbf16, #tpu.memory_space<vmem>>, %arg2: memref<1x48xf32, #tpu.memory_space<vmem>>, %arg3: memref<8x1xf32, #tpu.memory_space<vmem>>, %arg4: memref<8x1xf32, #tpu.memory_space<vmem>>, %arg5: memref<4x8xbf16, #tpu.memory_space<vmem>>, %arg6: memref<4x1xf32, #tpu.memory_space<vmem>>, %arg7: memref<8x20xbf16, #tpu.memory_space<vmem>>, %arg8: memref<8x1xf32, #tpu.memory_space<vmem>>, %arg9: memref<8x1xf32, #tpu.memory_space<vmem>>, %arg10: memref<4x8xbf16, #tpu.memory_space<vmem>>, %arg11: memref<4x1xf32, #tpu.memory_space<vmem>>, %arg12: memref<8x20xbf16, #tpu.memory_space<vmem>>, %arg13: memref<16x8xbf16, #tpu.memory_space<vmem>>, %arg14: memref<1x16x32xf32, #tpu.memory_space<vmem>>, %arg15: memref<20x32xf32, #tpu.memory_space<vmem>>) attributes {dimension_semantics = [#tpu.dimension_semantics<parallel>], iteration_bounds = array<i64: 1>, scalar_prefetch = 0 : i64, scratch_operands = 1 : i64, tpu.core_type = #tpu.core_type<tc>, window_params = [{transform_indices = @transform_0, window_bounds = array<i64: 8, 48>}, {pipeline_mode = #tpu.pipeline_mode<synchronous>, transform_indices = @transform_1, window_bounds = array<i64: 1, 48>}, {pipeline_mode = #tpu.pipeline_mode<synchronous>, transform_indices = @transform_2, window_bounds = array<i64: 8, 1>}, {pipeline_mode = #tpu.pipeline_mode<synchronous>, transform_indices = @transform_3, window_bounds = array<i64: 8, 1>}, {pipeline_mode = #tpu.pipeline_mode<synchronous>, transform_indices = @transform_4, window_bounds = array<i64: 4, 8>}, {pipeline_mode = #tpu.pipeline_mode<synchronous>, transform_indices = @transform_5, window_bounds = array<i64: 4, 1>}, {pipeline_mode = #tpu.pipeline_mode<synchronous>, transform_indices = @transform_6, window_bounds = array<i64: 8, 20>}, {pipeline_mode = #tpu.pipeline_mode<synchronous>, transform_indices = @transform_7, window_bounds = array<i64: 8, 1>}, {pipeline_mode = #tpu.pipeline_mode<synchronous>, transform_indices = @transform_8, window_bounds = array<i64: 8, 1>}, {pipeline_mode = #tpu.pipeline_mode<synchronous>, transform_indices = @transform_9, window_bounds = array<i64: 4, 8>}, {pipeline_mode = #tpu.pipeline_mode<synchronous>, transform_indices = @transform_10, window_bounds = array<i64: 4, 1>}, {pipeline_mode = #tpu.pipeline_mode<synchronous>, transform_indices = @transform_11, window_bounds = array<i64: 8, 20>}, {pipeline_mode = #tpu.pipeline_mode<synchronous>, transform_indices = @transform_12, window_bounds = array<i64: 16, 8>}, {transform_indices = @transform_13, window_bounds = array<i64: 1, 16, 32>}]} {
    %c0 = arith.constant 0 : index
    %c0_0 = arith.constant 0 : index
    %0 = vector.load %arg1[%c0, %c0_0] : memref<8x48xbf16, #tpu.memory_space<vmem>>, vector<8x48xbf16>
    %1 = arith.extf %0 : vector<8x48xbf16> to vector<8x48xf32>
    %c0_1 = arith.constant 0 : index
    %c0_2 = arith.constant 0 : index
    %2 = vector.load %arg2[%c0_1, %c0_2] : memref<1x48xf32, #tpu.memory_space<vmem>>, vector<1x48xf32>
    %c0_3 = arith.constant 0 : index
    %c0_4 = arith.constant 0 : index
    %3 = vector.load %arg13[%c0_3, %c0_4] : memref<16x8xbf16, #tpu.memory_space<vmem>>, vector<16x8xbf16>
    %4 = vector.extract_strided_slice %0 {offsets = [0, 2], sizes = [8, 32], strides = [1, 1]} : vector<8x48xbf16> to vector<8x32xbf16>
    %cst = arith.constant dense<0.000000e+00> : vector<16x32xf32>
    %5 = tpu.matmul %3, %4, %cst {dimension_numbers = #tpu.dot_dimension_numbers<[1], [0], [0], [1], [0, 0, 1, 1], [], []>} : vector<16x8xbf16>, vector<8x32xbf16>, vector<16x32xf32> -> vector<16x32xf32>
    %c0_5 = arith.constant 0 : index
    %c0_6 = arith.constant 0 : index
    %6 = vector.load %arg3[%c0_5, %c0_6] : memref<8x1xf32, #tpu.memory_space<vmem>>, vector<8x1xf32>
    %7 = vector.broadcast %6 : vector<8x1xf32> to vector<8x48xf32>
    %8 = arith.mulf %1, %7 : vector<8x48xf32>
    %c0_7 = arith.constant 0 : index
    %c0_8 = arith.constant 0 : index
    %9 = vector.load %arg4[%c0_7, %c0_8] : memref<8x1xf32, #tpu.memory_space<vmem>>, vector<8x1xf32>
    %10 = vector.broadcast %9 : vector<8x1xf32> to vector<8x48xf32>
    %11 = arith.addf %8, %10 : vector<8x48xf32>
    %cst_9 = arith.constant 0.000000e+00 : f32
    %12 = vector.broadcast %cst_9 : f32 to vector<8x48xf32>
    %13 = arith.maximumf %11, %12 : vector<8x48xf32>
    %c0_10 = arith.constant 0 : index
    %c0_11 = arith.constant 0 : index
    %14 = vector.load %arg5[%c0_10, %c0_11] : memref<4x8xbf16, #tpu.memory_space<vmem>>, vector<4x8xbf16>
    %15 = arith.truncf %13 : vector<8x48xf32> to vector<8x48xbf16>
    %cst_12 = arith.constant dense<0.000000e+00> : vector<4x48xf32>
    %16 = tpu.matmul %14, %15, %cst_12 {dimension_numbers = #tpu.dot_dimension_numbers<[1], [0], [0], [1], [0, 0, 1, 1], [], []>} : vector<4x8xbf16>, vector<8x48xbf16>, vector<4x48xf32> -> vector<4x48xf32>
    %c0_13 = arith.constant 0 : index
    %c0_14 = arith.constant 0 : index
    %17 = vector.load %arg6[%c0_13, %c0_14] : memref<4x1xf32, #tpu.memory_space<vmem>>, vector<4x1xf32>
    %18 = vector.broadcast %17 : vector<4x1xf32> to vector<4x48xf32>
    %19 = arith.addf %16, %18 : vector<4x48xf32>
    %cst_15 = arith.constant 0.000000e+00 : f32
    %20 = vector.broadcast %cst_15 : f32 to vector<4x48xf32>
    %21 = arith.maximumf %19, %20 : vector<4x48xf32>
    %22 = vector.broadcast %2 : vector<1x48xf32> to vector<4x48xf32>
    %23 = arith.mulf %21, %22 : vector<4x48xf32>
    %24 = vector.extract_strided_slice %23 {offsets = [0, 1], sizes = [4, 32], strides = [1, 1]} : vector<4x48xf32> to vector<4x32xf32>
    %c0_16 = arith.constant 0 : index
    %c0_17 = arith.constant 0 : index
    %25 = vector.load %arg15[%c0_16, %c0_17] : memref<20x32xf32, #tpu.memory_space<vmem>>, vector<4x32xf32>
    tpu.vector_store %arg15[%c0_16, %c0_17], %24 {strides = array<i32>} : memref<20x32xf32, #tpu.memory_space<vmem>>, vector<4x32xf32>,
    %26 = vector.extract_strided_slice %23 {offsets = [0, 13], sizes = [4, 32], strides = [1, 1]} : vector<4x48xf32> to vector<4x32xf32>
    %c4 = arith.constant 4 : index
    %c0_18 = arith.constant 0 : index
    %27 = vector.load %arg15[%c4, %c0_18] : memref<20x32xf32, #tpu.memory_space<vmem>>, vector<4x32xf32>
    tpu.vector_store %arg15[%c4, %c0_18], %26 {strides = array<i32>} : memref<20x32xf32, #tpu.memory_space<vmem>>, vector<4x32xf32>,
    %28 = vector.extract_strided_slice %23 {offsets = [0, 2], sizes = [4, 32], strides = [1, 1]} : vector<4x48xf32> to vector<4x32xf32>
    %c8 = arith.constant 8 : index
    %c0_19 = arith.constant 0 : index
    %29 = vector.load %arg15[%c8, %c0_19] : memref<20x32xf32, #tpu.memory_space<vmem>>, vector<4x32xf32>
    tpu.vector_store %arg15[%c8, %c0_19], %28 {strides = array<i32>} : memref<20x32xf32, #tpu.memory_space<vmem>>, vector<4x32xf32>,
    %30 = vector.extract_strided_slice %23 {offsets = [0, 14], sizes = [4, 32], strides = [1, 1]} : vector<4x48xf32> to vector<4x32xf32>
    %c12 = arith.constant 12 : index
    %c0_20 = arith.constant 0 : index
    %31 = vector.load %arg15[%c12, %c0_20] : memref<20x32xf32, #tpu.memory_space<vmem>>, vector<4x32xf32>
    tpu.vector_store %arg15[%c12, %c0_20], %30 {strides = array<i32>} : memref<20x32xf32, #tpu.memory_space<vmem>>, vector<4x32xf32>,
    %32 = vector.extract_strided_slice %23 {offsets = [0, 3], sizes = [4, 32], strides = [1, 1]} : vector<4x48xf32> to vector<4x32xf32>
    %c16 = arith.constant 16 : index
    %c0_21 = arith.constant 0 : index
    %33 = vector.load %arg15[%c16, %c0_21] : memref<20x32xf32, #tpu.memory_space<vmem>>, vector<4x32xf32>
    tpu.vector_store %arg15[%c16, %c0_21], %32 {strides = array<i32>} : memref<20x32xf32, #tpu.memory_space<vmem>>, vector<4x32xf32>,
    %c0_22 = arith.constant 0 : index
    %c0_23 = arith.constant 0 : index
    %34 = vector.load %arg7[%c0_22, %c0_23] : memref<8x20xbf16, #tpu.memory_space<vmem>>, vector<8x20xbf16>
    %c0_24 = arith.constant 0 : index
    %c0_25 = arith.constant 0 : index
    %35 = vector.load %arg15[%c0_24, %c0_25] : memref<20x32xf32, #tpu.memory_space<vmem>>, vector<20x32xf32>
    %36 = arith.truncf %35 : vector<20x32xf32> to vector<20x32xbf16>
    %cst_26 = arith.constant dense<0.000000e+00> : vector<8x32xf32>
    %37 = tpu.matmul %34, %36, %cst_26 {dimension_numbers = #tpu.dot_dimension_numbers<[1], [0], [0], [1], [0, 0, 1, 1], [], []>} : vector<8x20xbf16>, vector<20x32xbf16>, vector<8x32xf32> -> vector<8x32xf32>
    %38 = vector.extract_strided_slice %5 {offsets = [0, 0], sizes = [8, 32], strides = [1, 1]} : vector<16x32xf32> to vector<8x32xf32>
    %39 = arith.addf %37, %38 : vector<8x32xf32>
    %c0_27 = arith.constant 0 : index
    %c0_28 = arith.constant 0 : index
    %c0_29 = arith.constant 0 : index
    %40 = vector.load %arg14[%c0_27, %c0_28, %c0_29] : memref<1x16x32xf32, #tpu.memory_space<vmem>>, vector<1x8x32xf32>
    %41 = vector.shape_cast %40 : vector<1x8x32xf32> to vector<8x32xf32>
    %42 = vector.shape_cast %39 : vector<8x32xf32> to vector<1x8x32xf32>
    tpu.vector_store %arg14[%c0_27, %c0_28, %c0_29], %42 {strides = array<i32>} : memref<1x16x32xf32, #tpu.memory_space<vmem>>, vector<1x8x32xf32>,
    %c0_30 = arith.constant 0 : index
    %c0_31 = arith.constant 0 : index
    %43 = vector.load %arg8[%c0_30, %c0_31] : memref<8x1xf32, #tpu.memory_space<vmem>>, vector<8x1xf32>
    %44 = vector.broadcast %43 : vector<8x1xf32> to vector<8x48xf32>
    %45 = arith.mulf %1, %44 : vector<8x48xf32>
    %c0_32 = arith.constant 0 : index
    %c0_33 = arith.constant 0 : index
    %46 = vector.load %arg9[%c0_32, %c0_33] : memref<8x1xf32, #tpu.memory_space<vmem>>, vector<8x1xf32>
    %47 = vector.broadcast %46 : vector<8x1xf32> to vector<8x48xf32>
    %48 = arith.addf %45, %47 : vector<8x48xf32>
    %cst_34 = arith.constant 0.000000e+00 : f32
    %49 = vector.broadcast %cst_34 : f32 to vector<8x48xf32>
    %50 = arith.maximumf %48, %49 : vector<8x48xf32>
    %c0_35 = arith.constant 0 : index
    %c0_36 = arith.constant 0 : index
    %51 = vector.load %arg10[%c0_35, %c0_36] : memref<4x8xbf16, #tpu.memory_space<vmem>>, vector<4x8xbf16>
    %52 = arith.truncf %50 : vector<8x48xf32> to vector<8x48xbf16>
    %cst_37 = arith.constant dense<0.000000e+00> : vector<4x48xf32>
    %53 = tpu.matmul %51, %52, %cst_37 {dimension_numbers = #tpu.dot_dimension_numbers<[1], [0], [0], [1], [0, 0, 1, 1], [], []>} : vector<4x8xbf16>, vector<8x48xbf16>, vector<4x48xf32> -> vector<4x48xf32>
    %c0_38 = arith.constant 0 : index
    %c0_39 = arith.constant 0 : index
    %54 = vector.load %arg11[%c0_38, %c0_39] : memref<4x1xf32, #tpu.memory_space<vmem>>, vector<4x1xf32>
    %55 = vector.broadcast %54 : vector<4x1xf32> to vector<4x48xf32>
    %56 = arith.addf %53, %55 : vector<4x48xf32>
    %cst_40 = arith.constant 0.000000e+00 : f32
    %57 = vector.broadcast %cst_40 : f32 to vector<4x48xf32>
    %58 = arith.maximumf %56, %57 : vector<4x48xf32>
    %59 = vector.broadcast %2 : vector<1x48xf32> to vector<4x48xf32>
    %60 = arith.mulf %58, %59 : vector<4x48xf32>
    %61 = vector.extract_strided_slice %60 {offsets = [0, 0], sizes = [4, 32], strides = [1, 1]} : vector<4x48xf32> to vector<4x32xf32>
    %c0_41 = arith.constant 0 : index
    %c0_42 = arith.constant 0 : index
    %62 = vector.load %arg15[%c0_41, %c0_42] : memref<20x32xf32, #tpu.memory_space<vmem>>, vector<4x32xf32>
    tpu.vector_store %arg15[%c0_41, %c0_42], %61 {strides = array<i32>} : memref<20x32xf32, #tpu.memory_space<vmem>>, vector<4x32xf32>,
    %63 = vector.extract_strided_slice %60 {offsets = [0, 1], sizes = [4, 32], strides = [1, 1]} : vector<4x48xf32> to vector<4x32xf32>
    %c4_43 = arith.constant 4 : index
    %c0_44 = arith.constant 0 : index
    %64 = vector.load %arg15[%c4_43, %c0_44] : memref<20x32xf32, #tpu.memory_space<vmem>>, vector<4x32xf32>
    tpu.vector_store %arg15[%c4_43, %c0_44], %63 {strides = array<i32>} : memref<20x32xf32, #tpu.memory_space<vmem>>, vector<4x32xf32>,
    %65 = vector.extract_strided_slice %60 {offsets = [0, 2], sizes = [4, 32], strides = [1, 1]} : vector<4x48xf32> to vector<4x32xf32>
    %c8_45 = arith.constant 8 : index
    %c0_46 = arith.constant 0 : index
    %66 = vector.load %arg15[%c8_45, %c0_46] : memref<20x32xf32, #tpu.memory_space<vmem>>, vector<4x32xf32>
    tpu.vector_store %arg15[%c8_45, %c0_46], %65 {strides = array<i32>} : memref<20x32xf32, #tpu.memory_space<vmem>>, vector<4x32xf32>,
    %67 = vector.extract_strided_slice %60 {offsets = [0, 3], sizes = [4, 32], strides = [1, 1]} : vector<4x48xf32> to vector<4x32xf32>
    %c12_47 = arith.constant 12 : index
    %c0_48 = arith.constant 0 : index
    %68 = vector.load %arg15[%c12_47, %c0_48] : memref<20x32xf32, #tpu.memory_space<vmem>>, vector<4x32xf32>
    tpu.vector_store %arg15[%c12_47, %c0_48], %67 {strides = array<i32>} : memref<20x32xf32, #tpu.memory_space<vmem>>, vector<4x32xf32>,
    %69 = vector.extract_strided_slice %60 {offsets = [0, 4], sizes = [4, 32], strides = [1, 1]} : vector<4x48xf32> to vector<4x32xf32>
    %c16_49 = arith.constant 16 : index
    %c0_50 = arith.constant 0 : index
    %70 = vector.load %arg15[%c16_49, %c0_50] : memref<20x32xf32, #tpu.memory_space<vmem>>, vector<4x32xf32>
    tpu.vector_store %arg15[%c16_49, %c0_50], %69 {strides = array<i32>} : memref<20x32xf32, #tpu.memory_space<vmem>>, vector<4x32xf32>,
    %c0_51 = arith.constant 0 : index
    %c0_52 = arith.constant 0 : index
    %71 = vector.load %arg12[%c0_51, %c0_52] : memref<8x20xbf16, #tpu.memory_space<vmem>>, vector<8x20xbf16>
    %c0_53 = arith.constant 0 : index
    %c0_54 = arith.constant 0 : index
    %72 = vector.load %arg15[%c0_53, %c0_54] : memref<20x32xf32, #tpu.memory_space<vmem>>, vector<20x32xf32>
    %73 = arith.truncf %72 : vector<20x32xf32> to vector<20x32xbf16>
    %cst_55 = arith.constant dense<0.000000e+00> : vector<8x32xf32>
    %74 = tpu.matmul %71, %73, %cst_55 {dimension_numbers = #tpu.dot_dimension_numbers<[1], [0], [0], [1], [0, 0, 1, 1], [], []>} : vector<8x20xbf16>, vector<20x32xbf16>, vector<8x32xf32> -> vector<8x32xf32>
    %75 = vector.extract_strided_slice %5 {offsets = [8, 0], sizes = [8, 32], strides = [1, 1]} : vector<16x32xf32> to vector<8x32xf32>
    %76 = arith.addf %74, %75 : vector<8x32xf32>
    %c0_56 = arith.constant 0 : index
    %c8_57 = arith.constant 8 : index
    %c0_58 = arith.constant 0 : index
    %77 = vector.load %arg14[%c0_56, %c8_57, %c0_58] : memref<1x16x32xf32, #tpu.memory_space<vmem>>, vector<1x8x32xf32>
    %78 = vector.shape_cast %77 : vector<1x8x32xf32> to vector<8x32xf32>
    %79 = vector.shape_cast %76 : vector<8x32xf32> to vector<1x8x32xf32>
    tpu.vector_store %arg14[%c0_56, %c8_57, %c0_58], %79 {strides = array<i32>} : memref<1x16x32xf32, #tpu.memory_space<vmem>>, vector<1x8x32xf32>,
    return
  }
  func.func @transform_0(%arg0: i32) -> (i32, i32) {
    %c0_i32 = arith.constant 0 : i32
    %c0_i32_0 = arith.constant 0 : i32
    return %c0_i32, %arg0 : i32, i32
  }
  func.func @transform_1(%arg0: i32) -> (i32, i32) {
    %c0_i32 = arith.constant 0 : i32
    %c0_i32_0 = arith.constant 0 : i32
    %c0_i32_1 = arith.constant 0 : i32
    return %c0_i32, %c0_i32_0 : i32, i32
  }
  func.func @transform_2(%arg0: i32) -> (i32, i32) {
    %c0_i32 = arith.constant 0 : i32
    %c0_i32_0 = arith.constant 0 : i32
    %c0_i32_1 = arith.constant 0 : i32
    return %c0_i32, %c0_i32_0 : i32, i32
  }
  func.func @transform_3(%arg0: i32) -> (i32, i32) {
    %c0_i32 = arith.constant 0 : i32
    %c0_i32_0 = arith.constant 0 : i32
    %c0_i32_1 = arith.constant 0 : i32
    return %c0_i32, %c0_i32_0 : i32, i32
  }
  func.func @transform_4(%arg0: i32) -> (i32, i32) {
    %c0_i32 = arith.constant 0 : i32
    %c0_i32_0 = arith.constant 0 : i32
    %c0_i32_1 = arith.constant 0 : i32
    return %c0_i32, %c0_i32_0 : i32, i32
  }
  func.func @transform_5(%arg0: i32) -> (i32, i32) {
    %c0_i32 = arith.constant 0 : i32
    %c0_i32_0 = arith.constant 0 : i32
    %c0_i32_1 = arith.constant 0 : i32
    return %c0_i32, %c0_i32_0 : i32, i32
  }
  func.func @transform_6(%arg0: i32) -> (i32, i32) {
    %c0_i32 = arith.constant 0 : i32
    %c0_i32_0 = arith.constant 0 : i32
    %c0_i32_1 = arith.constant 0 : i32
    return %c0_i32, %c0_i32_0 : i32, i32
  }
  func.func @transform_7(%arg0: i32) -> (i32, i32) {
    %c0_i32 = arith.constant 0 : i32
    %c0_i32_0 = arith.constant 0 : i32
    %c0_i32_1 = arith.constant 0 : i32
    return %c0_i32, %c0_i32_0 : i32, i32
  }
  func.func @transform_8(%arg0: i32) -> (i32, i32) {
    %c0_i32 = arith.constant 0 : i32
    %c0_i32_0 = arith.constant 0 : i32
    %c0_i32_1 = arith.constant 0 : i32
    return %c0_i32, %c0_i32_0 : i32, i32
  }
  func.func @transform_9(%arg0: i32) -> (i32, i32) {
    %c0_i32 = arith.constant 0 : i32
    %c0_i32_0 = arith.constant 0 : i32
    %c0_i32_1 = arith.constant 0 : i32
    return %c0_i32, %c0_i32_0 : i32, i32
  }
  func.func @transform_10(%arg0: i32) -> (i32, i32) {
    %c0_i32 = arith.constant 0 : i32
    %c0_i32_0 = arith.constant 0 : i32
    %c0_i32_1 = arith.constant 0 : i32
    return %c0_i32, %c0_i32_0 : i32, i32
  }
  func.func @transform_11(%arg0: i32) -> (i32, i32) {
    %c0_i32 = arith.constant 0 : i32
    %c0_i32_0 = arith.constant 0 : i32
    %c0_i32_1 = arith.constant 0 : i32
    return %c0_i32, %c0_i32_0 : i32, i32
  }
  func.func @transform_12(%arg0: i32) -> (i32, i32) {
    %c0_i32 = arith.constant 0 : i32
    %c0_i32_0 = arith.constant 0 : i32
    %c0_i32_1 = arith.constant 0 : i32
    return %c0_i32, %c0_i32_0 : i32, i32
  }
  func.func @transform_13(%arg0: i32) -> (i32, i32, i32) {
    %c0_i32 = arith.constant 0 : i32
    %c0_i32_0 = arith.constant 0 : i32
    %c0_i32_1 = arith.constant 0 : i32
    return %arg0, %c0_i32, %c0_i32_0 : i32, i32, i32
  }
}

</mosaic_0001>

<bundles_post_ra>
// kernel: tpu_custom_call.1
= control target key start
LH: loop header
LB: loop body
LE: loop exit
PB: predicated region body
PF: predicated region fallthrough
CT: control target
= control target key end

     0   :  { %v337_v2 = vmov 0   ;;  %s477_s0 = inlined_call_operand.vmem [shape: bf16[8,48], index: 0, kind: input, shape index: {}]   ;;  %s478_s1 = inlined_call_operand.vmem [shape: f32[1,48], index: 1, kind: input, shape index: {}]   ;;  %s479_s2 = inlined_call_operand.vmem [shape: f32[8,1], index: 2, kind: input, shape index: {}]   ;;  %s480_s3 = inlined_call_operand.vmem [shape: f32[8,1], index: 3, kind: input, shape index: {}]   ;;  %s481_s4 = inlined_call_operand.vmem [shape: bf16[4,8], index: 4, kind: input, shape index: {}]   ;;  %s482_s5 = inlined_call_operand.vmem [shape: f32[4,1], index: 5, kind: input, shape index: {}]   ;;  %s483_s6 = inlined_call_operand.vmem [shape: bf16[8,20], index: 6, kind: input, shape index: {}]   ;;  %s484_s7 = inlined_call_operand.vmem [shape: f32[8,1], index: 7, kind: input, shape index: {}]   ;;  %s485_s8 = inlined_call_operand.vmem [shape: f32[8,1], index: 8, kind: input, shape index: {}]   ;;  %s486_s9 = inlined_call_operand.vmem [shape: bf16[4,8], index: 9, kind: input, shape index: {}]   ;;  %s487_s10 = inlined_call_operand.vmem [shape: f32[4,1], index: 10, kind: input, shape index: {}]   ;;  %s488_s11 = inlined_call_operand.vmem [shape: bf16[8,20], index: 11, kind: input, shape index: {}]   ;;  %s489_s12 = inlined_call_operand.vmem [shape: bf16[16,8], index: 12, kind: input, shape index: {}]   ;;  %s490_s13 = inlined_call_operand.hbm [shape: f32[1,16,32], index: 13, kind: output, shape index: {}]  }
   0x1   :  { %v181_v0 = vld [vmem:[%s484_s7] sm:$0xff]  ;;  %308 = vset.pattern.permute.xlu1 %v337_v2  ;;  %307 = vset.pattern.permute.xlu0 %v337_v2 }
   0x2   :  { %v83_v1 = vld [vmem:[%s479_s2] sm:$0xff] }
   0x3   :  { %18 = vsyncpa [#allocation4], 0  ;;  %184 = vperm.xlu1 %308, %v181_v0   ;;  %86 = vperm.xlu0 %307, %v83_v1   ;;  %v188_v3 = vld [vmem:[%s485_s8] sm:$0xff]  ;;  %vm65_vm0 = vcmask 1043456   ;;  %vm61_vm1 = vcmask 64512   ;;  %s341_s22 = smov 125  }
   0x4   :  { %309 = vset.pattern.permute.xlu2 %v337_v2  ;;  %v90_v4 = vld [vmem:[%s480_s3] sm:$0xff]  ;;  %s342_s23 = smov 114   ;;  %vm134_vm2 = vcmask 257024   ;;  %vm162_vm3 = vcmask 1041408   ;;  %vm158_vm4 = vcmask 162816   ;;  %vm179_vm5 = vcmask 261120  }
   0x5   :  { %v100_v5 = vld [vmem:[%s482_s5] sm:$0xf]  ;;  %s275_s15 = sshll.u32 %s490_s13, 4  ;;  %s346_s7 = smov 8   ;;  %s276_s15 = int_to_ptr.hbm [resolvable:$true] %s275_s15 }
   0x6   :  { %103 = vperm.xlu2 %309, %v100_v5   ;;  %v198_v6 = vld [vmem:[%s487_s10] sm:$0xf]  ;;  %s338_s10 = smov 126  }
   0x7   :  { %v46_v8 = vld [vmem:[%s477_s0] sm:$0xf] }
   0x8   :  { %v47_v10 = vunpack.c.l.bf16 %v46_v8  ;;  %v98_v23 = vld [vmem:[%s481_s4] sm:$0x3]  ;;  %v57_v25 = vunpack.c.l.b16 %v46_v8  ;;  %s339_s4 = smov 115  }
   0x9   :  { %v196_v24 = vld [vmem:[%s486_s9] sm:$0x3]  ;;  %s340_s9 = smov 127  }
   0xa   :  { %v58_v26 = vpack.c.b16 %v57_v25, %v57_v25  ;;  %v310_v30 = vld [vmem:[%s478_s1] ss:$0 sm:$0xff]  ;;  %s343_s1 = smov 124  }
   0xb   :  { %191 = vperm.xlu1 %308, %v188_v3   ;;  %93 = vperm.xlu0 %307, %v90_v4   ;;  %v296_v43 = vld [vmem:[%s489_s12] sm:$0xff] }
   0xc   :  { %v152_v57 = vld [vmem:[%s483_s6] sm:$0xf]  ;;  %s344_s6 = smov [#allocation3]  }
   0xd   :  { %v243_v1 = vld [vmem:[%s488_s11] sm:$0xf]  ;;  %s273_s29 = sshll.u32 %s344_s6, 4  ;;  %s345_s11 = smov 128   ;;  %s274_s29 = int_to_ptr.vmem [resolvable:$true] %s273_s29 }
   0xe   :  { %201 = vperm.xlu2 %309, %v198_v6  }
  0x16   :  { %59 = vrot.lane.b32.xlu2 %v58_v26, %s338_s10 }
  0x60   :  { %v104_v27 = vpop.permute.xlu2 %103 }
  0x68   :  { %v202_v33 = vpop.permute.xlu2 %201 }
  0x70   :  { %v60_v40 = vpop.permute.xlu2 %59 }
  0x71   :  { %v67_v42 = vsel %vm65_vm0, %v60_v40, 0 }
  0x72   :  { %76 = vmatpush.bf16.msra.mxu0 %v67_v42 }
  0x75   :  { %v185_v7 = vpop.permute.xlu1 %184  ;;  %v87_v9 = vpop.permute.xlu0 %86  ;;  %291 = vmatmul.msk.bf16.vlgmr.msra.gmra.mxu0 %vm61_vm1, %v296_v43 }
  0x76   :  { %v187_v11 = vmul.f32 %v185_v7, %v47_v10  ;;  %v89_v12 = vmul.f32 %v87_v9, %v47_v10 }
  0x7d   :  { %v192_v13 = vpop.permute.xlu1 %191  ;;  %v94_v14 = vpop.permute.xlu0 %93 }
  0x7e   :  { %v194_v15 = vadd.f32 %v192_v13, %v187_v11  ;;  %v96_v16 = vadd.f32 %v94_v14, %v89_v12 }
  0x80   :  { %v195_v17 = vmax.f32 %v194_v15, 0.0  ;;  %v97_v18 = vmax.f32 %v96_v16, 0.0 }
  0x82   :  { %v197_v19 = vpack.c.bf16 %v195_v17, %v195_v17  ;;  %v99_v20 = vpack.c.bf16 %v97_v18, %v97_v18 }
  0x84   :  { %v110_v21 = vsel %vm65_vm0, %v99_v20, 0  ;;  %v208_v22 = vsel %vm65_vm0, %v197_v19, 0 }
  0x85   :  { %119 = vmatpush.bf16.msra.mxu1 %v110_v21  ;;  %217 = vmatpush.bf16.msra.mxu3 %v208_v22 }
  0x88   :  { %292 = vmatmul.msk.bf16.vlgmr.msra.gmra.mxu1 %vm61_vm1, %v98_v23  ;;  %294 = vmatmul.msk.bf16.vlgmr.msra.gmra.mxu3 %vm61_vm1, %v196_v24 }
  0xf2   :  { %v78_v2 = vpop.f32.mrf.mxu0 }
  0xfa   :  { %v80_v5 = vpop.f32.mrf.mxu0 }
 0x105   :  { %v121_v28 = vpop.f32.mrf.mxu1 }
 0x106   :  { %v122_v29 = vadd.f32 %v121_v28, %v104_v27 }
 0x108   :  { %v125_v31 = vmax.f32 %v122_v29, 0.0 }
 0x10a   :  { %v129_v32 = vmul.f32 %v310_v30, %v125_v31 }
 0x10b   :  { %v219_v34 = vpop.f32.mrf.mxu3 }
 0x10c   :  { %v220_v35 = vadd.f32 %v219_v34, %v202_v33  ;;  %136 = vrot.lane.b32.xlu2 %v129_v32, %s339_s4  ;;  %131 = vrot.lane.b32.xlu1 %v129_v32, %s340_s9 }
 0x10d   :  { %148 = vrot.lane.b32.xlu0 %v129_v32, %s341_s22  ;;  %v123_v36 = vpop.f32.mrf.mxu1 }
 0x10e   :  { %v223_v37 = vmax.f32 %v220_v35, 0.0 }
 0x110   :  { %v224_v38 = vmul.f32 %v310_v30, %v223_v37 }
 0x113   :  { %v221_v39 = vpop.f32.mrf.mxu3 }
 0x114   :  { %231 = vrot.lane.b32.xlu2 %v224_v38, %s338_s10  ;;  %144 = vrot.lane.b32.xlu1 %v129_v32, %s342_s23 }
 0x115   :  { %140 = vrot.lane.b32.xlu0 %v129_v32, %s338_s10 }
 0x11c   :  { %227 = vrot.lane.b32.xlu1 %v224_v38, %s340_s9 }
 0x11d   :  { %239 = vrot.lane.b32.xlu0 %v224_v38, %s343_s1 }
 0x125   :  { %235 = vrot.lane.b32.xlu0 %v224_v38, %s341_s22 }
 0x166   :  { %v137_v41 = vpop.permute.xlu2 %136 }
 0x167   :  { %139 = vst.msk [vmem:[#allocation2 + $0x4] sm:$0xf] %vm134_vm2, %v137_v41 }
 0x16e   :  { %v232_v55 = vpop.permute.xlu2 %231 }
 0x17e   :  { %v132_v44 = vpop.permute.xlu1 %131 }
 0x17f   :  { %135 = vst.msk [vmem:[#allocation2] sm:$0xf] %vm134_vm2, %v132_v44  ;;  %v149_v45 = vpop.permute.xlu0 %148 }
 0x180   :  { %151 = vst.msk [vmem:[#allocation2 + $0x10] sm:$0xf] %vm134_vm2, %v149_v45 }
 0x186   :  { %v145_v46 = vpop.permute.xlu1 %144  ;;  %v153_v47 = vld [vmem:[#allocation2] sm:$0xff] }
 0x187   :  { %147 = vst.msk [vmem:[#allocation2 + $0xc] sm:$0xf] %vm134_vm2, %v145_v46  ;;  %v141_v48 = vpop.permute.xlu0 %140  ;;  %v155_v49 = vld [vmem:[#allocation2 + $0x10] sm:$0xf] }
 0x188   :  { %143 = vst.msk [vmem:[#allocation2 + $0x8] sm:$0xf] %vm134_vm2, %v141_v48  ;;  %v157_v50 = vpack.c.bf16 %v155_v49, %v155_v49 }
 0x189   :  { %225 = vst.msk [vmem:[#allocation2] sm:$0xf] %vm134_vm2, %v224_v38 }
 0x18a   :  { %v164_v51 = vsel %vm162_vm3, %v157_v50, 0 }
 0x18b   :  { %172 = vmatpush.bf16.msra.mxu2 %v164_v51 }
 0x18e   :  { %v228_v52 = vpop.permute.xlu1 %227 }
 0x18f   :  { %230 = vst.msk [vmem:[#allocation2 + $0x4] sm:$0xf] %vm134_vm2, %v228_v52  ;;  %v240_v53 = vpop.permute.xlu0 %239  ;;  %v154_v54 = vld [vmem:[#allocation2 + $0x8] sm:$0xff] }
 0x190   :  { %242 = vst.msk [vmem:[#allocation2 + $0x10] sm:$0xf] %vm134_vm2, %v240_v53  ;;  %v156_v56 = vpack.c.bf16 %v154_v54, %v153_v47 }
 0x191   :  { %234 = vst.msk [vmem:[#allocation2 + $0x8] sm:$0xf] %vm134_vm2, %v232_v55 }
 0x192   :  { %173 = vmatpush.bf16.msra.mxu2 %v156_v56 }
 0x195   :  { %293 = vmatmul.msk.bf16.vlgmr.msra.gmra.mxu2 %vm158_vm4, %v152_v57 }
 0x196   :  { %v244_v62 = vld [vmem:[#allocation2] sm:$0xff] }
 0x197   :  { %v236_v58 = vpop.permute.xlu0 %235  ;;  %v246_v59 = vld [vmem:[#allocation2 + $0x10] sm:$0xf] }
 0x198   :  { %238 = vst.msk [vmem:[#allocation2 + $0xc] sm:$0xf] %vm134_vm2, %v236_v58  ;;  %v248_v60 = vpack.c.bf16 %v246_v59, %v246_v59 }
 0x19a   :  { %v253_v61 = vsel %vm162_vm3, %v248_v60, 0 }
 0x19b   :  { %261 = vmatpush.bf16.msrb.mxu0 %v253_v61 }
 0x19f   :  { %v245_v63 = vld [vmem:[#allocation2 + $0x8] sm:$0xff] }
 0x1a0   :  { %v247_v0 = vpack.c.bf16 %v245_v63, %v244_v62 }
 0x1a2   :  { %262 = vmatpush.bf16.msrb.mxu0 %v247_v0 }
 0x1a5   :  { %295 = vmatmul.msk.bf16.vlgmr.msrb.gmra.mxu0 %vm158_vm4, %v243_v1 }
 0x218   :  { %v175_v3 = vpop.f32.mrf.mxu2 }
 0x219   :  { %v176_v4 = vadd.f32 %v175_v3, %v78_v2 }
 0x21b   :  { %180 = vst.msk [vmem:[#allocation3] sm:$0xff] %vm179_vm5, %v176_v4 }
 0x220   :  { %v177_v6 = vpop.f32.mrf.mxu2 }
 0x222   :  { %v264_v7 = vpop.f32.mrf.mxu0 }
 0x223   :  { %v265_v8 = vadd.f32 %v264_v7, %v80_v5 }
 0x225   :  { %268 = vst.msk [vmem:[#allocation3 + $0x8] sm:$0xff] %vm179_vm5, %v265_v8 }
 0x226   :  { %281 = dma.vmem_to_hbm [thread:$0]  %s274_s29, 256, %s276_s15, [#allocation4], %s345_s11, %s345_s11, %s346_s7  }
 0x22a   :  { %v266_v9 = vpop.f32.mrf.mxu0 }
 0x22b   :  { %335 = dma.done.wait [#allocation4], 256  }
 0x22c   :  { %336 = vsyncadd [#allocation4], 4294967040 }
 0x22d   :  { %286 = vsyncpa [#allocation4], 1 }

</bundles_post_ra>
